<compile_context>
chip_gen: v6e
topology: v6e:2x2x1
jax: 0.10.0
libtpu: 0.0.40
codegen_flags: <defaults>
</compile_context>

<pallas_src>
import jax
import jax.numpy as jnp
from jax.experimental import pallas as pl
from jax.experimental.pallas import tpu as pltpu

LANE = 128


def _round_up(n, m):
    return (n + m - 1) // m * m


def simplenet_kernel(x_ref, w1_ref, b1_ref, w2_ref, b2_ref, w3_ref, b3_ref,
                     o_ref):
    # x arrives unpadded (tb, d_in) in f32; cast to bf16 for the MXU and feed
    # the small-K matmul directly (Mosaic pads the contraction internally).
    x = x_ref[...].astype(w1_ref.dtype)
    # fc1 + ReLU  (bf16 operands on the MXU, f32 accumulate / elementwise)
    h1 = jnp.dot(x, w1_ref[...], preferred_element_type=jnp.float32)
    h1 = jnp.maximum(h1 + b1_ref[...], 0.0)
    # fc2 + ReLU
    h2 = jnp.dot(h1.astype(w2_ref.dtype), w2_ref[...],
                 preferred_element_type=jnp.float32)
    h2 = jnp.maximum(h2 + b2_ref[...], 0.0)
    # fc3 (no activation); compact (tb, d_out) result stored directly
    out = jnp.dot(h2.astype(w3_ref.dtype), w3_ref[...],
                  preferred_element_type=jnp.float32)
    o_ref[...] = (out + b3_ref[...]).astype(o_ref.dtype)


def prepare_params(params, *, matmul_dtype=jnp.bfloat16):
    """One-time weight prep (pad hidden dim to 128 lanes + cast to bf16).

    Hoisted out of the per-call forward path so a DQN-style hot loop pays for
    this exactly once.
    """
    w1, b1, w2, b2, w3, b3 = params
    d_in, d_h = w1.shape
    d_out = w3.shape[1]
    d_h_p = _round_up(d_h, LANE)

    def padw(w, rows, cols):
        return jnp.pad(w, ((0, rows - w.shape[0]),
                           (0, cols - w.shape[1]))).astype(matmul_dtype)

    def padb(b, cols):
        return jnp.pad(b, ((0, 0), (0, cols - b.shape[1]))).astype(jnp.float32)

    return {
        "w1": padw(w1, d_in, d_h_p), "b1": padb(b1, d_h_p),
        "w2": padw(w2, d_h_p, d_h_p), "b2": padb(b2, d_h_p),
        "w3": padw(w3, d_h_p, d_out), "b3": padb(b3, d_out),
        "dims": (d_in, d_h, d_out, d_h_p),
    }


def simplenet_forward(x, prep, *, tb=None):
    """Fused 3-layer MLP forward. x: (B, input_dim) f32 -> (B, output_dim) f32."""
    w1p, b1p = prep["w1"], prep["b1"]
    w2p, b2p = prep["w2"], prep["b2"]
    w3p, b3p = prep["w3"], prep["b3"]
    d_in, d_h, d_out, d_h_p = prep["dims"]

    B = x.shape[0]
    assert x.shape[1] == d_in

    # Batch tile: >= 2 grid steps once B >= 16 (keeps both v7x TCs busy via the
    # "parallel" axis), capped at 1024 rows to amortize per-step overhead on
    # v5e/v6e/v7x without over-padding tiny batches.
    if tb is None:
        tb = min(1024, _round_up(pl.cdiv(B, 2), 8))
    b_p = _round_up(B, tb)
    grid = (b_p // tb,)

    # Only batch padding (when B % tb != 0) remains on the per-call path; x is
    # neither lane-padded nor dtype-cast in the wrapper.
    xp = x if b_p == B else jnp.pad(x, ((0, b_p - B), (0, 0)))

    const = lambda a: pl.BlockSpec(a.shape, lambda i: (0, 0))

    # Honest post-change traffic: unpadded x read, resident weights once,
    # compact output write.
    flops = 2 * b_p * (d_in * d_h_p + d_h_p * d_h_p + d_h_p * d_out)
    bytes_accessed = (
        xp.size * xp.dtype.itemsize
        + sum(w.size * w.dtype.itemsize for w in (w1p, w2p, w3p))
        + sum(b.size * b.dtype.itemsize for b in (b1p, b2p, b3p))
        + b_p * d_out * 4)

    out = pl.pallas_call(
        simplenet_kernel,
        out_shape=jax.ShapeDtypeStruct((b_p, d_out), jnp.float32),
        grid=grid,
        in_specs=[
            pl.BlockSpec((tb, d_in), lambda i: (i, 0)),   # x: batch-tiled, unpadded
            const(w1p), const(b1p),                       # weights resident in VMEM
            const(w2p), const(b2p),
            const(w3p), const(b3p),
        ],
        out_specs=pl.BlockSpec((tb, d_out), lambda i: (i, 0)),
        compiler_params=pltpu.CompilerParams(
            dimension_semantics=("parallel",),
            vmem_limit_bytes=32 * 1024 * 1024,
        ),
        cost_estimate=pl.CostEstimate(
            flops=flops, transcendentals=0, bytes_accessed=bytes_accessed),
    )(xp, w1p, b1p, w2p, b2p, w3p, b3p)

    # Strip batch padding only (padded rows hold bias-propagated junk).
    return out if b_p == B else out[:B]


def init_params(key, input_dim, hidden_dim, output_dim):
    """Deterministic synthetic parameter init (shapes mirror nn.Linear)."""
    ks = jax.random.split(key, 6)
    scale = 0.1
    w1 = scale * jax.random.normal(ks[0], (input_dim, hidden_dim), jnp.float32)
    b1 = scale * jax.random.normal(ks[1], (1, hidden_dim), jnp.float32)
    w2 = scale * jax.random.normal(ks[2], (hidden_dim, hidden_dim), jnp.float32)
    b2 = scale * jax.random.normal(ks[3], (1, hidden_dim), jnp.float32)
    w3 = scale * jax.random.normal(ks[4], (hidden_dim, output_dim), jnp.float32)
    b3 = scale * jax.random.normal(ks[5], (1, output_dim), jnp.float32)
    return (w1, b1, w2, b2, w3, b3)


def reference_forward_f32(x, params):
    """Pure-f32 JAX reference of SimpleNet.forward."""
    w1, b1, w2, b2, w3, b3 = params
    h1 = jnp.maximum(x @ w1 + b1, 0.0)
    h2 = jnp.maximum(h1 @ w2 + b2, 0.0)
    return h2 @ w3 + b3


def reference_forward_bf16(x, params):
    """Reference with the same bf16-operand / f32-accumulate recipe as the kernel."""
    w1, b1, w2, b2, w3, b3 = params
    bf = jnp.bfloat16
    h1 = jnp.dot(x.astype(bf), w1.astype(bf),
                 preferred_element_type=jnp.float32) + b1
    h1 = jnp.maximum(h1, 0.0)
    h2 = jnp.dot(h1.astype(bf), w2.astype(bf),
                 preferred_element_type=jnp.float32) + b2
    h2 = jnp.maximum(h2, 0.0)
    return jnp.dot(h2.astype(bf), w3.astype(bf),
                   preferred_element_type=jnp.float32) + b3


if __name__ == "__main__":
    # Small shapes consistent with a DQN-style MLP (e.g. CartPole):
    batch, input_dim, hidden_dim, output_dim = 8, 4, 32, 2

    key = jax.random.PRNGKey(0)
    kx, kp, kx2 = jax.random.split(key, 3)
    x = jax.random.normal(kx, (batch, input_dim), jnp.float32)
    params = init_params(kp, input_dim, hidden_dim, output_dim)
    prep = prepare_params(params)   # one-time weight pad/cast (hoisted)

    # --- small batch (grid = 1 step) ---
    out = jax.block_until_ready(simplenet_forward(x, prep))
    assert out.shape == (batch, output_dim)
    assert jnp.allclose(out, reference_forward_bf16(x, params),
                        atol=2e-3, rtol=1e-2), "mismatch vs bf16-matched reference"
    assert jnp.allclose(out, reference_forward_f32(x, params),
                        atol=2e-2, rtol=2e-2), "mismatch vs f32 reference"

    # --- larger, non-aligned batch (exercises grid > 1 and batch padding) ---
    big_b = 300
    x2 = jax.random.normal(kx2, (big_b, input_dim), jnp.float32)
    out2 = jax.block_until_ready(simplenet_forward(x2, prep))
    assert out2.shape == (big_b, output_dim)
    assert jnp.allclose(out2, reference_forward_bf16(x2, params),
                        atol=2e-3, rtol=1e-2), "mismatch vs bf16-matched reference (B=300)"
    assert jnp.allclose(out2, reference_forward_f32(x2, params),
                        atol=2e-2, rtol=2e-2), "mismatch vs f32 reference (B=300)"

    print("KERNEL_OK")
</pallas_src>

<mosaic_0001>
module attributes {stable_mosaic.version = 11 : i64} {
  func.func @simplenet_kernel(%arg0: i32, %arg1: memref<8x4xf32, #tpu.memory_space<vmem>>, %arg2: memref<4x128xbf16, #tpu.memory_space<vmem>>, %arg3: memref<1x128xf32, #tpu.memory_space<vmem>>, %arg4: memref<128x128xbf16, #tpu.memory_space<vmem>>, %arg5: memref<1x128xf32, #tpu.memory_space<vmem>>, %arg6: memref<128x2xbf16, #tpu.memory_space<vmem>>, %arg7: memref<1x2xf32, #tpu.memory_space<vmem>>, %arg8: memref<8x2xf32, #tpu.memory_space<vmem>>) attributes {dimension_semantics = [#tpu.dimension_semantics<parallel>], iteration_bounds = array<i64: 1>, scalar_prefetch = 0 : i64, scratch_operands = 0 : i64, tpu.core_type = #tpu.core_type<tc>, window_params = [{transform_indices = @transform_0, window_bounds = array<i64: 8, 4>}, {pipeline_mode = #tpu.pipeline_mode<synchronous>, transform_indices = @transform_1, window_bounds = array<i64: 4, 128>}, {pipeline_mode = #tpu.pipeline_mode<synchronous>, transform_indices = @transform_2, window_bounds = array<i64: 1, 128>}, {pipeline_mode = #tpu.pipeline_mode<synchronous>, transform_indices = @transform_3, window_bounds = array<i64: 128, 128>}, {pipeline_mode = #tpu.pipeline_mode<synchronous>, transform_indices = @transform_4, window_bounds = array<i64: 1, 128>}, {pipeline_mode = #tpu.pipeline_mode<synchronous>, transform_indices = @transform_5, window_bounds = array<i64: 128, 2>}, {pipeline_mode = #tpu.pipeline_mode<synchronous>, transform_indices = @transform_6, window_bounds = array<i64: 1, 2>}, {transform_indices = @transform_7, window_bounds = array<i64: 8, 2>}]} {
    %c0 = arith.constant 0 : index
    %c0_0 = arith.constant 0 : index
    %0 = vector.load %arg1[%c0, %c0_0] : memref<8x4xf32, #tpu.memory_space<vmem>>, vector<8x4xf32>
    %1 = arith.truncf %0 : vector<8x4xf32> to vector<8x4xbf16>
    %c0_1 = arith.constant 0 : index
    %c0_2 = arith.constant 0 : index
    %2 = vector.load %arg2[%c0_1, %c0_2] : memref<4x128xbf16, #tpu.memory_space<vmem>>, vector<4x128xbf16>
    %cst = arith.constant dense<0.000000e+00> : vector<8x128xf32>
    %3 = tpu.matmul %1, %2, %cst {dimension_numbers = #tpu.dot_dimension_numbers<[1], [0], [0], [1], [0, 0, 1, 1], [], []>} : vector<8x4xbf16>, vector<4x128xbf16>, vector<8x128xf32> -> vector<8x128xf32>
    %c0_3 = arith.constant 0 : index
    %c0_4 = arith.constant 0 : index
    %4 = vector.load %arg3[%c0_3, %c0_4] : memref<1x128xf32, #tpu.memory_space<vmem>>, vector<1x128xf32>
    %5 = vector.broadcast %4 : vector<1x128xf32> to vector<8x128xf32>
    %6 = arith.addf %3, %5 : vector<8x128xf32>
    %cst_5 = arith.constant 0.000000e+00 : f32
    %7 = vector.broadcast %cst_5 : f32 to vector<8x128xf32>
    %8 = arith.maximumf %6, %7 : vector<8x128xf32>
    %9 = arith.truncf %8 : vector<8x128xf32> to vector<8x128xbf16>
    %c0_6 = arith.constant 0 : index
    %c0_7 = arith.constant 0 : index
    %10 = vector.load %arg4[%c0_6, %c0_7] : memref<128x128xbf16, #tpu.memory_space<vmem>>, vector<128x128xbf16>
    %cst_8 = arith.constant dense<0.000000e+00> : vector<8x128xf32>
    %11 = tpu.matmul %9, %10, %cst_8 {dimension_numbers = #tpu.dot_dimension_numbers<[1], [0], [0], [1], [0, 0, 1, 1], [], []>} : vector<8x128xbf16>, vector<128x128xbf16>, vector<8x128xf32> -> vector<8x128xf32>
    %c0_9 = arith.constant 0 : index
    %c0_10 = arith.constant 0 : index
    %12 = vector.load %arg5[%c0_9, %c0_10] : memref<1x128xf32, #tpu.memory_space<vmem>>, vector<1x128xf32>
    %13 = vector.broadcast %12 : vector<1x128xf32> to vector<8x128xf32>
    %14 = arith.addf %11, %13 : vector<8x128xf32>
    %cst_11 = arith.constant 0.000000e+00 : f32
    %15 = vector.broadcast %cst_11 : f32 to vector<8x128xf32>
    %16 = arith.maximumf %14, %15 : vector<8x128xf32>
    %17 = arith.truncf %16 : vector<8x128xf32> to vector<8x128xbf16>
    %c0_12 = arith.constant 0 : index
    %c0_13 = arith.constant 0 : index
    %18 = vector.load %arg6[%c0_12, %c0_13] : memref<128x2xbf16, #tpu.memory_space<vmem>>, vector<128x2xbf16>
    %cst_14 = arith.constant dense<0.000000e+00> : vector<8x2xf32>
    %19 = tpu.matmul %17, %18, %cst_14 {dimension_numbers = #tpu.dot_dimension_numbers<[1], [0], [0], [1], [0, 0, 1, 1], [], []>} : vector<8x128xbf16>, vector<128x2xbf16>, vector<8x2xf32> -> vector<8x2xf32>
    %c0_15 = arith.constant 0 : index
    %c0_16 = arith.constant 0 : index
    %20 = vector.load %arg7[%c0_15, %c0_16] : memref<1x2xf32, #tpu.memory_space<vmem>>, vector<1x2xf32>
    %21 = vector.broadcast %20 : vector<1x2xf32> to vector<8x2xf32>
    %22 = arith.addf %19, %21 : vector<8x2xf32>
    %c0_17 = arith.constant 0 : index
    %c0_18 = arith.constant 0 : index
    %23 = vector.load %arg8[%c0_17, %c0_18] : memref<8x2xf32, #tpu.memory_space<vmem>>, vector<8x2xf32>
    tpu.vector_store %arg8[%c0_17, %c0_18], %22 {strides = array<i32>} : memref<8x2xf32, #tpu.memory_space<vmem>>, vector<8x2xf32>,
    return
  }
  func.func @transform_0(%arg0: i32) -> (i32, i32) {
    %c0_i32 = arith.constant 0 : i32
    %c0_i32_0 = arith.constant 0 : i32
    return %arg0, %c0_i32 : i32, i32
  }
  func.func @transform_1(%arg0: i32) -> (i32, i32) {
    %c0_i32 = arith.constant 0 : i32
    %c0_i32_0 = arith.constant 0 : i32
    %c0_i32_1 = arith.constant 0 : i32
    return %c0_i32, %c0_i32_0 : i32, i32
  }
  func.func @transform_2(%arg0: i32) -> (i32, i32) {
    %c0_i32 = arith.constant 0 : i32
    %c0_i32_0 = arith.constant 0 : i32
    %c0_i32_1 = arith.constant 0 : i32
    return %c0_i32, %c0_i32_0 : i32, i32
  }
  func.func @transform_3(%arg0: i32) -> (i32, i32) {
    %c0_i32 = arith.constant 0 : i32
    %c0_i32_0 = arith.constant 0 : i32
    %c0_i32_1 = arith.constant 0 : i32
    return %c0_i32, %c0_i32_0 : i32, i32
  }
  func.func @transform_4(%arg0: i32) -> (i32, i32) {
    %c0_i32 = arith.constant 0 : i32
    %c0_i32_0 = arith.constant 0 : i32
    %c0_i32_1 = arith.constant 0 : i32
    return %c0_i32, %c0_i32_0 : i32, i32
  }
  func.func @transform_5(%arg0: i32) -> (i32, i32) {
    %c0_i32 = arith.constant 0 : i32
    %c0_i32_0 = arith.constant 0 : i32
    %c0_i32_1 = arith.constant 0 : i32
    return %c0_i32, %c0_i32_0 : i32, i32
  }
  func.func @transform_6(%arg0: i32) -> (i32, i32) {
    %c0_i32 = arith.constant 0 : i32
    %c0_i32_0 = arith.constant 0 : i32
    %c0_i32_1 = arith.constant 0 : i32
    return %c0_i32, %c0_i32_0 : i32, i32
  }
  func.func @transform_7(%arg0: i32) -> (i32, i32) {
    %c0_i32 = arith.constant 0 : i32
    %c0_i32_0 = arith.constant 0 : i32
    return %arg0, %c0_i32 : i32, i32
  }
}

</mosaic_0001>

<bundles_post_ra>
// kernel: tpu_custom_call.1
= control target key start
LH: loop header
LB: loop body
LE: loop exit
PB: predicated region body
PF: predicated region fallthrough
CT: control target
= control target key end

     0   :  { %vm41_vm0 = vcmask 1041408   ;;  %v421_v0 = vmov 0.0   ;;  %vm422_vm1 = vmmov 0   ;;  %vm37_vm2 = vcmask 31744   ;;  %s552_s1 = inlined_call_operand.vmem [shape: bf16[4,128], index: 1, kind: input, shape index: {}]   ;;  %s553_s0 = inlined_call_operand.vmem [shape: f32[8,4], index: 0, kind: input, shape index: {}]   ;;  %s554_s3 = inlined_call_operand.vmem [shape: bf16[128,128], index: 3, kind: input, shape index: {}]   ;;  %s555_s5 = inlined_call_operand.vmem [shape: bf16[128,2], index: 5, kind: input, shape index: {}]   ;;  %s556_s2 = inlined_call_operand.vmem [shape: f32[1,128], index: 2, kind: input, shape index: {}]   ;;  %s557_s4 = inlined_call_operand.vmem [shape: f32[1,128], index: 4, kind: input, shape index: {}]   ;;  %s558_s6 = inlined_call_operand.vmem [shape: f32[1,2], index: 6, kind: input, shape index: {}]   ;;  %s559_s7 = inlined_call_operand.vmem [shape: f32[8,2], index: 7, kind: output, shape index: {}]  }
   0x1   :  { %357 = vmatprep.subr.bf16.mxu0 %v421_v0  ;;  %v29_v1 = vld [vmem:[%s552_s1] sm:$0x3]  ;;  %359 = vmatprep.mubr.msk.bf16.mxu0 %vm422_vm1, %v421_v0  ;;  %v405_v5 = vld [vmem:[%s554_s3 + $0x38] sm:$0xff]   ;;  %v406_v6 = vld [vmem:[%s554_s3 + $0x30] sm:$0xff]   ;;  %vm311_vm3 = vcmask 15360  }
   0x2   :  { %v27_v2 = vld [vmem:[%s553_s0] sm:$0xff]  ;;  %v43_v3 = vsel %vm41_vm0, %v29_v1, 0  ;;  %363 = vmatprep.subr.bf16.mxu1 %v421_v0  ;;  %379 = vmatprep.mubr.msk.bf16.mxu1 %vm422_vm1, %v421_v0  ;;  %v407_v7 = vld [vmem:[%s554_s3 + $0x28] sm:$0xff]   ;;  %v409_v9 = vld [vmem:[%s554_s3 + $0x18] sm:$0xff]  }
   0x3   :  { %v28_v4 = vpack.c.bf16 %v27_v2, %v27_v2  ;;  %358 = vmatpush3.bf16.msra.mxu0 %v43_v3  ;;  %364 = vmatpush3.bf16.msra.mxu1 %v405_v5  ;;  %v408_v8 = vld [vmem:[%s554_s3 + $0x20] sm:$0xff]   ;;  %v410_v10 = vld [vmem:[%s554_s3 + $0x10] sm:$0xff]   ;;  %v411_v11 = vld [vmem:[%s554_s3 + $0x8] sm:$0xff]  }
   0x4   :  { %383 = vmatprep.subr.bf16.mxu0 %v421_v0  ;;  %365 = vmatprep.subr.bf16.mxu1 %v421_v0  ;;  %v412_v12 = vld [vmem:[%s554_s3] sm:$0xff]   ;;  %v413_v13 = vld [vmem:[%s555_s5 + $0x38] sm:$0xff]   ;;  %v414_v14 = vld [vmem:[%s555_s5 + $0x30] sm:$0xff]  }
   0x5   :  { %v415_v15 = vld [vmem:[%s555_s5 + $0x28] sm:$0xff]   ;;  %v416_v16 = vld [vmem:[%s555_s5 + $0x20] sm:$0xff]   ;;  %v417_v17 = vld [vmem:[%s555_s5 + $0x18] sm:$0xff]  }
   0x6   :  { %360 = vmatmul.mubr.msk.bf16.vlgmr.msra.gmra.mxu0 %vm37_vm2, %v28_v4  ;;  %v418_v18 = vld [vmem:[%s555_s5 + $0x10] sm:$0xff]   ;;  %v317_v19 = vld [vmem:[%s556_s2] ss:$0 sm:$0xff]  ;;  %v419_v27 = vld [vmem:[%s555_s5 + $0x8] sm:$0xff]  }
   0x7   :  { %399 = vmatprep.mubr.msk.bf16.mxu0 %vm422_vm1, %v421_v0  ;;  %366 = vmatpush3.bf16.msra.mxu1 %v406_v6  ;;  %v420_v28 = vld [vmem:[%s555_s5] sm:$0xff]  }
   0x8   :  { %367 = vmatprep.subr.bf16.mxu1 %v421_v0  ;;  %384 = vmatpush3.bf16.msra.mxu0 %v413_v13  ;;  %v319_v29 = vld [vmem:[%s557_s4] ss:$0 sm:$0xff] }
   0x9   :  { %385 = vmatprep.subr.bf16.mxu0 %v421_v0  ;;  %v328_v37 = vld [vmem:[%s558_s6] ss:$0 sm:$0xff] }
   0xb   :  { %368 = vmatpush3.bf16.msra.mxu1 %v407_v7 }
   0xc   :  { %369 = vmatprep.subr.bf16.mxu1 %v421_v0  ;;  %386 = vmatpush3.bf16.msra.mxu0 %v414_v14 }
   0xd   :  { %387 = vmatprep.subr.bf16.mxu0 %v421_v0 }
   0xf   :  { %370 = vmatpush3.bf16.msra.mxu1 %v408_v8 }
  0x10   :  { %371 = vmatprep.subr.bf16.mxu1 %v421_v0  ;;  %388 = vmatpush3.bf16.msra.mxu0 %v415_v15 }
  0x11   :  { %389 = vmatprep.subr.bf16.mxu0 %v421_v0 }
  0x13   :  { %372 = vmatpush3.bf16.msra.mxu1 %v409_v9 }
  0x14   :  { %373 = vmatprep.subr.bf16.mxu1 %v421_v0  ;;  %390 = vmatpush3.bf16.msra.mxu0 %v416_v16 }
  0x15   :  { %391 = vmatprep.subr.bf16.mxu0 %v421_v0 }
  0x17   :  { %374 = vmatpush3.bf16.msra.mxu1 %v410_v10 }
  0x18   :  { %375 = vmatprep.subr.bf16.mxu1 %v421_v0  ;;  %392 = vmatpush3.bf16.msra.mxu0 %v417_v17 }
  0x19   :  { %393 = vmatprep.subr.bf16.mxu0 %v421_v0 }
  0x1b   :  { %376 = vmatpush3.bf16.msra.mxu1 %v411_v11 }
  0x1c   :  { %377 = vmatprep.subr.bf16.mxu1 %v421_v0  ;;  %394 = vmatpush3.bf16.msra.mxu0 %v418_v18 }
  0x1d   :  { %395 = vmatprep.subr.bf16.mxu0 %v421_v0 }
  0x1f   :  { %378 = vmatpush3.bf16.msra.mxu1 %v412_v12 }
  0x20   :  { %396 = vmatpush3.bf16.msra.mxu0 %v419_v27 }
  0x21   :  { %397 = vmatprep.subr.bf16.mxu0 %v421_v0 }
  0x24   :  { %398 = vmatpush3.bf16.msra.mxu0 %v420_v28 }
  0xc6   :  { %v79_v20 = vpop.f32.mrf.mxu0 }
  0xc7   :  { %v80_v21 = vadd.f32 %v317_v19, %v79_v20 }
  0xc8   :  { %v361_v22 = vpop.f32.mrf.mxu0 }
  0xc9   :  { %v85_v23 = vmax.f32 %v80_v21, 0.0 }
  0xca   :  { %v82_v24 = vpop.f32.mrf.mxu0 }
  0xcb   :  { %v86_v25 = vpack.c.bf16 %v85_v23, %v85_v23 }
  0xcc   :  { %v362_v26 = vpop.f32.mrf.mxu0 }
  0xcd   :  { %380 = vmatmul.mubr.bf16.vlgmr.msra.gmra.mxu1 %v86_v25 }
 0x18d   :  { %v192_v30 = vpop.f32.mrf.mxu1 }
 0x18e   :  { %v193_v31 = vadd.f32 %v319_v29, %v192_v30 }
 0x18f   :  { %v381_v32 = vpop.f32.mrf.mxu1 }
 0x190   :  { %v198_v33 = vmax.f32 %v193_v31, 0.0 }
 0x191   :  { %v195_v34 = vpop.f32.mrf.mxu1 }
 0x192   :  { %v199_v35 = vpack.c.bf16 %v198_v33, %v198_v33 }
 0x193   :  { %v382_v36 = vpop.f32.mrf.mxu1 }
 0x194   :  { %400 = vmatmul.mubr.bf16.vlgmr.msra.gmra.mxu0 %v199_v35 }
 0x254   :  { %v305_v38 = vpop.f32.mrf.mxu0 }
 0x255   :  { %v306_v39 = vadd.f32 %v328_v37, %v305_v38 }
 0x256   :  { %v401_v40 = vpop.f32.mrf.mxu0 }
 0x257   :  { %312 = vst.msk [vmem:[%s559_s7] sm:$0xff] %vm311_vm3, %v306_v39 }
 0x258   :  { %v308_v41 = vpop.f32.mrf.mxu0 }
 0x25a   :  { %v402_v42 = vpop.f32.mrf.mxu0 }

</bundles_post_ra>
